<compile_context>
chip_gen: v7x
topology: tpu7x:2x2x1
jax: 0.10.0
libtpu: 0.0.40
codegen_flags: <defaults>
</compile_context>

<pallas_src>
import functools

import jax
import jax.numpy as jnp
from jax import lax
from jax.experimental import pallas as pl
from jax.experimental.pallas import tpu as pltpu


_FALLBACK_VMEM_BYTES = 64 * 1024 * 1024      # v7x-safe assumption if query fails


def _round_up(v, m):
    return ((v + m - 1) // m) * m


def _vmem_capacity_bytes():
    try:
        cap = getattr(pltpu.get_tpu_info(), "vmem_capacity_bytes", None)
        if cap:
            return int(cap)
    except Exception:
        pass
    return _FALLBACK_VMEM_BYTES


def _pick_tile_rows(n, w, itemsize, g, m, vmem_capacity, max_rows=None):
    """Largest row tile TN (multiple of 8 sublanes) such that the
    double-buffered native-dtype input slab, ~3 f32-sized temporaries and the
    resident (G, M, M) accumulator stay inside a conservative fraction of this
    chip's VMEM (64 MiB/TC on v7x, 128 MiB on v5e/v6e)."""
    budget = int(vmem_capacity * 0.6)
    acc_bytes = g * _round_up(m, 8) * _round_up(max(m, 1), 128) * 4
    row_bytes = _round_up(w, 128) * (2 * itemsize + 3 * 4)
    tn = (budget - acc_bytes - (1 << 20)) // row_bytes
    tn = max(128, min(int(tn), 2048))
    tn -= tn % 128
    tn = min(tn, _round_up(n, 8))
    if max_rows is not None:
        tn = min(tn, _round_up(max(1, min(int(max_rows), n)), 8))
    return max(tn, 8)


def _decorr_kernel(x_ref, s_ref, corr_ref, whit_ref, *,
                   G, M, TN, NT, n_total,
                   need_grad, need_corr, need_whit, masked):
    """Grid = (NC, NT): axis 0 is a 'parallel' split of the sample axis (keeps
    both v7x TensorCores busy even when G == 1); axis 1 walks that split's row
    tiles sequentially while the (G, M, M) accumulator and the scalar loss
    sums stay resident in VMEM."""
    n = pl.program_id(1)

    @pl.when(n == 0)
    def _init():
        s_ref[...] = jnp.zeros_like(s_ref)
        corr_ref[...] = jnp.zeros_like(corr_ref)
        whit_ref[...] = jnp.zeros_like(whit_ref)

    x = x_ref[...]                                       # (TN, G*M), native dtype
    if masked:
        # Boundary / overhang tiles: zero out rows past the true sample count.
        c = pl.program_id(0)
        row = (c * NT + n) * TN + lax.broadcasted_iota(jnp.int32, (TN, 1), 0)
        keep = row < n_total
        x = jnp.where(keep, x, jnp.zeros_like(x))

    if need_corr or need_whit:
        xf = x.astype(jnp.float32)
        d = xf * xf                                      # D = x*x           (VPU)

    # TODO(synk): for very large group counts G this static unroll inflates
    # compile time; a grid-over-groups variant would be preferable there.
    corr_acc = jnp.zeros((1, 1), jnp.float32)
    for g in range(G):
        cols = slice(g * M, (g + 1) * M)
        if need_grad:
            xg = x[:, cols]                              # (TN, M), native dtype
            s_ref[g] += lax.dot_general(                 # X_g^T X_g         (MXU)
                xg, xg, (((0,), (0,)), ((), ())),
                preferred_element_type=jnp.float32)
        if need_corr:
            dg = d[:, cols]
            rs = jnp.sum(dg, axis=1, keepdims=True)          # sum_j D_ij
            rss = jnp.sum(dg * dg, axis=1, keepdims=True)    # sum_j D_ij^2
            # sum_i sum_{j!=k} (x_ij x_ik)^2 = sum_i (rs_i^2 - rss_i)
            corr_acc = corr_acc + jnp.sum(rs * rs - rss, keepdims=True)

    if need_corr:
        corr_ref[0] += corr_acc
    if need_whit:
        v2 = (d - 1.0) * (d - 1.0)                       # V^2
        if masked:
            v2 = jnp.where(keep, v2, 0.0)                # masked rows would add 1
        whit_ref[0] += jnp.sum(v2, keepdims=True)


def decorr_loss(x, kappa, compute_grad=True, compute_loss=True, batched=False,
                max_rows_per_tile=None):
    """JAX/Pallas equivalent of DecorrLoss.forward."""
    assert kappa is not None, "Specify kappa for loss and gradient computation"
    assert 0.0 <= kappa <= 1.0, "kappa must be between 0 and 1"

    if not compute_grad and not compute_loss:
        return None, None, None

    x = jnp.asarray(x)                           # keep native dtype (no f32 up-cast)
    if not batched:
        b, l, d = x.shape
        G, M = 1, d
        x2 = x.reshape(b * l, d)                 # (N, G*M): free reshape
    else:
        b, l, d, m = x.shape
        G, M = d, m
        x2 = x.reshape(b * l, d * m)             # (N, G*M): free reshape, no HBM transpose
    N, W = x2.shape

    need_grad = bool(compute_grad)
    need_corr = bool(compute_loss) and kappa < 1.0
    need_whit = bool(compute_loss) and kappa > 0.0

    vmem_cap = _vmem_capacity_bytes()
    TN = _pick_tile_rows(N, W, x2.dtype.itemsize, G, M, vmem_cap,
                         max_rows=max_rows_per_tile)
    n_blocks = pl.cdiv(N, TN)                    # total row tiles
    NC = 2 if n_blocks >= 2 else 1               # 2-way split for v7x's two TCs
    NT = pl.cdiv(n_blocks, NC)                   # tiles per core partial
    masked = (NC * NT * TN) != N

    kernel = functools.partial(
        _decorr_kernel, G=G, M=M, TN=TN, NT=NT, n_total=N,
        need_grad=need_grad, need_corr=need_corr, need_whit=need_whit,
        masked=masked)

    def x_map(c, n):
        # Clamp so overhang steps of the second core re-read a valid block;
        # their contribution is masked to zero inside the kernel.
        return (jnp.minimum(c * NT + n, n_blocks - 1), 0)

    s_parts, corr_parts, whit_parts = pl.pallas_call(
        kernel,
        out_shape=(
            jax.ShapeDtypeStruct((NC * G, M, M), jnp.float32),   # per-core X^T X
            jax.ShapeDtypeStruct((NC, 1, 1), jnp.float32),       # per-core corr sum
            jax.ShapeDtypeStruct((NC, 1, 1), jnp.float32),       # per-core whit sum
        ),
        grid_spec=pltpu.PrefetchScalarGridSpec(
            num_scalar_prefetch=0,
            grid=(NC, NT),
            in_specs=[pl.BlockSpec((TN, W), x_map)],
            out_specs=[
                pl.BlockSpec((G, M, M), lambda c, n: (c, 0, 0)),
                pl.BlockSpec((1, 1, 1), lambda c, n: (c, 0, 0)),
                pl.BlockSpec((1, 1, 1), lambda c, n: (c, 0, 0)),
            ]),
        compiler_params=pltpu.CompilerParams(
            dimension_semantics=("parallel", "arbitrary"),
            vmem_limit_bytes=int(vmem_cap * 0.75)),
    )(x2)

    grad = None
    if compute_grad:
        s = jnp.sum(s_parts.reshape(NC, G, M, M), axis=0)    # (G, M, M) = X^T X
        mean_s = s / float(N)
        eye = jnp.eye(M, dtype=bool)
        if kappa == 0.0:
            g_all = jnp.where(eye, 0.0, mean_s)
        elif kappa == 1.0:
            g_all = jnp.where(eye, mean_s - 1.0, 0.0)
        else:
            g_all = jnp.where(eye, kappa * (mean_s - 1.0), (1.0 - kappa) * mean_s)
        g_all = g_all.astype(x.dtype)
        grad = g_all if batched else g_all[0]

    corr_loss = whit_loss = None
    if compute_loss:
        if kappa < 1.0:
            corr_loss = (jnp.sum(corr_parts) / float(G * N * M * M)).astype(x.dtype)
        if kappa > 0.0:
            whit_loss = (jnp.sum(whit_parts) / float(G * N * M)).astype(x.dtype)

    return grad, corr_loss, whit_loss


# ----------------------------------------------------------------------------
# Pure-JAX reference (direct transcription of the PyTorch module) for checking.
# ----------------------------------------------------------------------------
def decorr_loss_ref(x, kappa, batched):
    x = jnp.asarray(x, jnp.float32)
    if not batched:
        d = x.shape[-1]
        xf = x.reshape(-1, d)
        mean_dim = 0
    else:
        b, l, d, m = x.shape
        xf = jnp.transpose(x, (2, 0, 1, 3)).reshape(d, -1, m)
        mean_dim = 1
    D = xf * xf
    V = D - 1.0
    C = xf[..., :, None] * xf[..., None, :]
    eye = jnp.eye(C.shape[-1], dtype=bool)
    C = jnp.where(eye, 0.0, C)
    mean_c = jnp.mean(C, axis=mean_dim)
    mean_v = jnp.mean(V, axis=mean_dim)
    diag_embed = jnp.eye(C.shape[-1]) * mean_v[..., None, :]
    if kappa == 0.0:
        grad = mean_c
    elif kappa == 1.0:
        grad = diag_embed
    else:
        grad = (1.0 - kappa) * mean_c + kappa * diag_embed
    corr_loss = jnp.mean(C * C) if kappa < 1.0 else None
    whit_loss = jnp.mean(V * V) if kappa > 0.0 else None
    return grad, corr_loss, whit_loss


if __name__ == "__main__":
    key = jax.random.PRNGKey(0)
    k1, k2, k3 = jax.random.split(key, 3)

    # Non-batched path: x of shape (B, L, d)      -> grad (d, d)
    x_seq = jax.random.normal(k1, (4, 64, 32), dtype=jnp.float32)
    # Batched path:     x of shape (B, L, d, m)   -> grad (d, m, m)
    x_bat = jax.random.normal(k2, (2, 8, 4, 16), dtype=jnp.float32)
    # Ragged N (150 rows) + forced small tile: exercises boundary masking,
    # the 2-way core split and multi-tile pipelining.
    x_rag = jax.random.normal(k3, (3, 50, 32), dtype=jnp.float32)

    cases = [
        (x_seq, False, None, (0.0, 0.5, 1.0)),
        (x_bat, True, None, (0.0, 0.5, 1.0)),
        (x_rag, False, 64, (0.5,)),
    ]

    ok = True
    for xv, batched, max_rows, kappas in cases:
        for kappa in kappas:
            grad, cl, wl = decorr_loss(xv, kappa, compute_grad=True,
                                       compute_loss=True, batched=batched,
                                       max_rows_per_tile=max_rows)
            grad = jax.block_until_ready(grad)
            g_r, cl_r, wl_r = decorr_loss_ref(xv, kappa, batched)
            ok &= bool(jnp.allclose(grad, g_r, rtol=1e-4, atol=1e-4))
            if cl_r is not None:
                ok &= bool(jnp.allclose(cl, cl_r, rtol=1e-4, atol=1e-4))
            else:
                ok &= cl is None
            if wl_r is not None:
                ok &= bool(jnp.allclose(wl, wl_r, rtol=1e-4, atol=1e-4))
            else:
                ok &= wl is None

    if ok:
        print("KERNEL_OK")
    else:
        print("MISMATCH")
</pallas_src>

<mosaic_0001>
module attributes {stable_mosaic.version = 11 : i64} {
  func.func @_decorr_kernel(%arg0: i32, %arg1: i32, %arg2: memref<256x32xf32, #tpu.memory_space<vmem>>, %arg3: memref<1x32x32xf32, #tpu.memory_space<vmem>>, %arg4: memref<1x1x1xf32, #tpu.memory_space<vmem>>, %arg5: memref<1x1x1xf32, #tpu.memory_space<vmem>>) attributes {dimension_semantics = [#tpu.dimension_semantics<parallel>, #tpu.dimension_semantics<arbitrary>], iteration_bounds = array<i64: 1, 1>, scalar_prefetch = 0 : i64, scratch_operands = 0 : i64, tpu.core_type = #tpu.core_type<tc>, window_params = [{transform_indices = @transform_0, window_bounds = array<i64: 256, 32>}, {transform_indices = @transform_1, window_bounds = array<i64: 1, 32, 32>}, {transform_indices = @transform_2, window_bounds = array<i64: 1, 1, 1>}, {transform_indices = @transform_3, window_bounds = array<i64: 1, 1, 1>}]} {
    %c0_i32 = arith.constant 0 : i32
    %0 = arith.cmpi eq, %arg1, %c0_i32 : i32
    %1 = arith.extui %0 : i1 to i32
    %c0_i32_0 = arith.constant 0 : i32
    %2 = arith.cmpi ne, %1, %c0_i32_0 : i32
    scf.if %2 {
      %cst_18 = arith.constant 0.000000e+00 : f32
      %32 = vector.broadcast %cst_18 : f32 to vector<1x32x32xf32>
      %c0_19 = arith.constant 0 : index
      %c0_20 = arith.constant 0 : index
      %c0_21 = arith.constant 0 : index
      %33 = vector.load %arg3[%c0_19, %c0_20, %c0_21] : memref<1x32x32xf32, #tpu.memory_space<vmem>>, vector<1x32x32xf32>
      tpu.vector_store %arg3[%c0_19, %c0_20, %c0_21], %32 {strides = array<i32>} : memref<1x32x32xf32, #tpu.memory_space<vmem>>, vector<1x32x32xf32>,
      %cst_22 = arith.constant 0.000000e+00 : f32
      %34 = vector.broadcast %cst_22 : f32 to vector<1x1x1xf32>
      %c0_23 = arith.constant 0 : index
      %c0_24 = arith.constant 0 : index
      %c0_25 = arith.constant 0 : index
      %35 = vector.load %arg4[%c0_23, %c0_24, %c0_25] : memref<1x1x1xf32, #tpu.memory_space<vmem>>, vector<1x1x1xf32>
      tpu.vector_store %arg4[%c0_23, %c0_24, %c0_25], %34 {strides = array<i32>} : memref<1x1x1xf32, #tpu.memory_space<vmem>>, vector<1x1x1xf32>,
      %cst_26 = arith.constant 0.000000e+00 : f32
      %36 = vector.broadcast %cst_26 : f32 to vector<1x1x1xf32>
      %c0_27 = arith.constant 0 : index
      %c0_28 = arith.constant 0 : index
      %c0_29 = arith.constant 0 : index
      %37 = vector.load %arg5[%c0_27, %c0_28, %c0_29] : memref<1x1x1xf32, #tpu.memory_space<vmem>>, vector<1x1x1xf32>
      tpu.vector_store %arg5[%c0_27, %c0_28, %c0_29], %36 {strides = array<i32>} : memref<1x1x1xf32, #tpu.memory_space<vmem>>, vector<1x1x1xf32>,
    } else {
    }
    %c0 = arith.constant 0 : index
    %c0_1 = arith.constant 0 : index
    %3 = vector.load %arg2[%c0, %c0_1] : memref<256x32xf32, #tpu.memory_space<vmem>>, vector<256x32xf32>
    %4 = arith.mulf %3, %3 : vector<256x32xf32>
    %cst = arith.constant 0.000000e+00 : f32
    %5 = vector.broadcast %cst : f32 to vector<1x1xf32>
    %c0_2 = arith.constant 0 : index
    %c0_3 = arith.constant 0 : index
    %c0_4 = arith.constant 0 : index
    %6 = vector.load %arg3[%c0_2, %c0_3, %c0_4] : memref<1x32x32xf32, #tpu.memory_space<vmem>>, vector<1x32x32xf32>
    %7 = vector.shape_cast %6 : vector<1x32x32xf32> to vector<32x32xf32>
    %cst_5 = arith.constant dense<0.000000e+00> : vector<32x32xf32>
    %8 = tpu.matmul %3, %3, %cst_5 {dimension_numbers = #tpu.dot_dimension_numbers<[0], [0], [1], [1], [0, 1, 1, 1], [], []>} : vector<256x32xf32>, vector<256x32xf32>, vector<32x32xf32> -> vector<32x32xf32>
    %9 = arith.addf %7, %8 : vector<32x32xf32>
    %c0_6 = arith.constant 0 : index
    %c0_7 = arith.constant 0 : index
    %c0_8 = arith.constant 0 : index
    %10 = vector.load %arg3[%c0_6, %c0_7, %c0_8] : memref<1x32x32xf32, #tpu.memory_space<vmem>>, vector<1x32x32xf32>
    %11 = vector.shape_cast %10 : vector<1x32x32xf32> to vector<32x32xf32>
    %12 = vector.shape_cast %9 : vector<32x32xf32> to vector<1x32x32xf32>
    tpu.vector_store %arg3[%c0_6, %c0_7, %c0_8], %12 {strides = array<i32>} : memref<1x32x32xf32, #tpu.memory_space<vmem>>, vector<1x32x32xf32>,
    %cst_9 = arith.constant dense<0.000000e+00> : vector<256xf32>
    %13 = vector.multi_reduction <add>, %4, %cst_9 [1] : vector<256x32xf32> to vector<256xf32>
    %14 = vector.shape_cast %13 : vector<256xf32> to vector<256x1xf32>
    %15 = arith.mulf %4, %4 : vector<256x32xf32>
    %cst_10 = arith.constant dense<0.000000e+00> : vector<256xf32>
    %16 = vector.multi_reduction <add>, %15, %cst_10 [1] : vector<256x32xf32> to vector<256xf32>
    %17 = vector.shape_cast %16 : vector<256xf32> to vector<256x1xf32>
    %18 = arith.mulf %14, %14 : vector<256x1xf32>
    %19 = arith.subf %18, %17 : vector<256x1xf32>
    %20 = vector.shape_cast %19 : vector<256x1xf32> to vector<1x256x1xf32>
    %cst_11 = arith.constant dense<0.000000e+00> : vector<1xf32>
    %21 = vector.multi_reduction <add>, %20, %cst_11 [1, 2] : vector<1x256x1xf32> to vector<1xf32>
    %22 = vector.shape_cast %21 : vector<1xf32> to vector<1x1x1xf32>
    %23 = vector.extract %22[0, 0, 0] : f32 from vector<1x1x1xf32>
    %24 = vector.broadcast %23 : f32 to vector<1x1xf32>
    %25 = arith.addf %5, %24 : vector<1x1xf32>
    %c0_12 = arith.constant 0 : index
    %c0_13 = arith.constant 0 : index
    %c0_14 = arith.constant 0 : index
    %26 = vector.load %arg4[%c0_12, %c0_13, %c0_14] : memref<1x1x1xf32, #tpu.memory_space<vmem>>, vector<1x1x1xf32>
    %27 = vector.shape_cast %26 : vector<1x1x1xf32> to vector<1x1xf32>
    %28 = arith.addf %27, %25 : vector<1x1xf32>
    %c0_15 = arith.constant 0 : index
    %c0_16 = arith.constant 0 : index
    %c0_17 = arith.constant 0 : index
    %29 = vector.load %arg4[%c0_15, %c0_16, %c0_17] : memref<1x1x1xf32, #tpu.memory_space<vmem>>, vector<1x1x1xf32>
    %30 = vector.shape_cast %29 : vector<1x1x1xf32> to vector<1x1xf32>
    %31 = vector.shape_cast %28 : vector<1x1xf32> to vector<1x1x1xf32>
    tpu.vector_store %arg4[%c0_15, %c0_16, %c0_17], %31 {strides = array<i32>} : memref<1x1x1xf32, #tpu.memory_space<vmem>>, vector<1x1x1xf32>,
    return
  }
  func.func @transform_0(%arg0: i32, %arg1: i32) -> (i32, i32) {
    %c1_i32 = arith.constant 1 : i32
    %0 = arith.muli %arg0, %c1_i32 : i32
    %1 = arith.addi %0, %arg1 : i32
    %c0_i32 = arith.constant 0 : i32
    %2 = arith.minsi %1, %c0_i32 : i32
    %c0_i32_0 = arith.constant 0 : i32
    %c0_i32_1 = arith.constant 0 : i32
    return %2, %c0_i32_0 : i32, i32
  }
  func.func @transform_1(%arg0: i32, %arg1: i32) -> (i32, i32, i32) {
    %c0_i32 = arith.constant 0 : i32
    %c0_i32_0 = arith.constant 0 : i32
    %c0_i32_1 = arith.constant 0 : i32
    return %arg0, %c0_i32, %c0_i32_0 : i32, i32, i32
  }
  func.func @transform_2(%arg0: i32, %arg1: i32) -> (i32, i32, i32) {
    %c0_i32 = arith.constant 0 : i32
    %c0_i32_0 = arith.constant 0 : i32
    %c0_i32_1 = arith.constant 0 : i32
    return %arg0, %c0_i32, %c0_i32_0 : i32, i32, i32
  }
  func.func @transform_3(%arg0: i32, %arg1: i32) -> (i32, i32, i32) {
    %c0_i32 = arith.constant 0 : i32
    %c0_i32_0 = arith.constant 0 : i32
    %c0_i32_1 = arith.constant 0 : i32
    return %arg0, %c0_i32, %c0_i32_0 : i32, i32, i32
  }
}

</mosaic_0001>

<bundles_post_ra>
// kernel: tpu_custom_call.1
= control target key start
LH: loop header
LB: loop body
LE: loop exit
PB: predicated region body
PF: predicated region fallthrough
CT: control target
= control target key end

     0   :  { %9 = vsyncpa [#allocation3], 0  ;;  %vm49_vm0 = vcmask 261120   ;;  %s1391_s0 = inlined_call_operand.vmem [shape: f32[256,32], index: 0, kind: input, shape index: {}]   ;;  %s1392_s1 = inlined_call_operand.hbm [shape: f32[1,32,32], index: 1, kind: output, shape index: {0}]   ;;  %s1393_s2 = inlined_call_operand.hbm [shape: f32[1,1,1], index: 2, kind: output, shape index: {1}]   ;;  %s1394_s3 = inlined_call_operand.hbm [shape: f32[1,1,1], index: 3, kind: output, shape index: {2}]  }
   0x1   :  { %v950_v0 = vld [vmem:[%s1391_s0 + $0x10] sm:$0xff]  ;;  %v955_v1 = vld [vmem:[%s1391_s0] sm:$0xff]  ;;  %v960_v2 = vld [vmem:[%s1391_s0 + $0x8] sm:$0xff] }
   0x2   :  { %v91_v3 = vmul.f32 %v950_v0, %v950_v0  ;;  %v89_v4 = vmul.f32 %v955_v1, %v955_v1  ;;  %v90_v5 = vmul.f32 %v960_v2, %v960_v2  ;;  %v971_v6 = vld [vmem:[%s1391_s0 + $0x18] sm:$0xff]  ;;  %v982_v14 = vld [vmem:[%s1391_s0 + $0x20] sm:$0xff]  ;;  %v991_v19 = vld [vmem:[%s1391_s0 + $0x28] sm:$0xff] }
   0x3   :  { %v92_v12 = vmul.f32 %v971_v6, %v971_v6  ;;  %v93_v17 = vmul.f32 %v982_v14, %v982_v14 }
   0x4   :  { %v289_v7 = vsel %vm49_vm0, %v91_v3, 0.0  ;;  %v283_v8 = vsel %vm49_vm0, %v89_v4, 0.0  ;;  %v379_v9 = vmul.f32 %v89_v4, %v89_v4  ;;  %v286_v11 = vsel %vm49_vm0, %v90_v5, 0.0 }
   0x5   :  { %290 = vadd.xlane.f32.xlu1 %v289_v7  ;;  %284 = vadd.xlane.f32.xlu0 %v283_v8  ;;  %v380_v13 = vmul.f32 %v90_v5, %v90_v5  ;;  %v292_v15 = vsel %vm49_vm0, %v92_v12, 0.0  ;;  %v381_v18 = vmul.f32 %v91_v3, %v91_v3 }
   0x6   :  { %v411_v10 = vsel %vm49_vm0, %v379_v9, 0.0 }
   0x7   :  { %v414_v16 = vsel %vm49_vm0, %v380_v13, 0.0 }
   0x9   :  { %412 = vadd.xlane.f32.xlu1 %v411_v10  ;;  %287 = vadd.xlane.f32.xlu0 %v286_v11 }
   0xa   :  { %10 = vsyncpa [#allocation5], 0  ;;  %v295_v20 = vsel %vm49_vm0, %v93_v17, 0.0  ;;  %v417_v21 = vsel %vm49_vm0, %v381_v18, 0.0  ;;  %v94_v22 = vmul.f32 %v991_v19, %v991_v19  ;;  %v382_v23 = vmul.f32 %v92_v12, %v92_v12  ;;  %v1000_v24 = vld [vmem:[%s1391_s0 + $0x30] sm:$0xff]  ;;  %v1009_v29 = vld [vmem:[%s1391_s0 + $0x38] sm:$0xff] }
   0xb   :  { %v95_v27 = vmul.f32 %v1000_v24, %v1000_v24  ;;  %v383_v28 = vmul.f32 %v93_v17, %v93_v17  ;;  %v96_v32 = vmul.f32 %v1009_v29, %v1009_v29  ;;  %v1018_v34 = vld [vmem:[%s1391_s0 + $0x40] sm:$0xff]  ;;  %v1029_v42 = vld [vmem:[%s1391_s0 + $0x48] sm:$0xff]  ;;  %v1038_v47 = vld [vmem:[%s1391_s0 + $0x50] sm:$0xff]  ;;  %vm571_vm1 = vcmask 7168  }
   0xc   :  { %v298_v25 = vsel %vm49_vm0, %v94_v22, 0.0  ;;  %v420_v26 = vsel %vm49_vm0, %v382_v23, 0.0  ;;  %v384_v33 = vmul.f32 %v94_v22, %v94_v22  ;;  %v97_v37 = vmul.f32 %v1018_v34, %v1018_v34  ;;  %v1047_v52 = vld [vmem:[%s1391_s0 + $0x58] sm:$0xff]  ;;  %v1056_v57 = vld [vmem:[%s1391_s0 + $0x60] sm:$0xff]  ;;  %v1065_v62 = vld [vmem:[%s1391_s0 + $0x68] sm:$0xff] }
   0xd   :  { %293 = vadd.xlane.f32.xlu1 %v292_v15  ;;  %415 = vadd.xlane.f32.xlu0 %v414_v16  ;;  %v301_v30 = vsel %vm49_vm0, %v95_v27, 0.0  ;;  %v423_v31 = vsel %vm49_vm0, %v383_v28, 0.0  ;;  %v304_v35 = vsel %vm49_vm0, %v96_v32, 0.0  ;;  %v385_v38 = vmul.f32 %v95_v27, %v95_v27  ;;  %v1074_v7 = vld [vmem:[%s1391_s0 + $0x70] sm:$0xff]  ;;  %v1082_v10 = vld [vmem:[%s1391_s0 + $0x80] sm:$0xff]  ;;  %v1088_v13 = vld [vmem:[%s1391_s0 + $0x78] sm:$0xff] }
   0xe   :  { %v426_v36 = vsel %vm49_vm0, %v384_v33, 0.0  ;;  %v307_v39 = vsel %vm49_vm0, %v97_v37, 0.0  ;;  %v386_v41 = vmul.f32 %v96_v32, %v96_v32  ;;  %v98_v44 = vmul.f32 %v1029_v42, %v1029_v42  ;;  %v1095_v16 = vld [vmem:[%s1391_s0 + $0x88] sm:$0xff] }
   0xf   :  { %v429_v40 = vsel %vm49_vm0, %v385_v38, 0.0  ;;  %v387_v46 = vmul.f32 %v97_v37, %v97_v37  ;;  %v99_v49 = vmul.f32 %v1038_v47, %v1038_v47  ;;  %v100_v54 = vmul.f32 %v1047_v52, %v1047_v52 }
  0x10   :  { %v432_v43 = vsel %vm49_vm0, %v386_v41, 0.0  ;;  %v310_v45 = vsel %vm49_vm0, %v98_v44, 0.0  ;;  %v388_v51 = vmul.f32 %v98_v44, %v98_v44  ;;  %v101_v59 = vmul.f32 %v1056_v57, %v1056_v57 }
  0x11   :  { %296 = vadd.xlane.f32.xlu1 %v295_v20  ;;  %418 = vadd.xlane.f32.xlu0 %v417_v21  ;;  %v435_v48 = vsel %vm49_vm0, %v387_v46, 0.0  ;;  %v313_v50 = vsel %vm49_vm0, %v99_v49, 0.0  ;;  %v316_v55 = vsel %vm49_vm0, %v100_v54, 0.0  ;;  %v389_v56 = vmul.f32 %v99_v49, %v99_v49  ;;  %v1105_v21 = vld [vmem:[%s1391_s0 + $0x90] sm:$0xff] }
  0x12   :  { %v438_v53 = vsel %vm49_vm0, %v388_v51, 0.0  ;;  %v319_v60 = vsel %vm49_vm0, %v101_v59, 0.0  ;;  %v390_v61 = vmul.f32 %v100_v54, %v100_v54  ;;  %v102_v3 = vmul.f32 %v1065_v62, %v1065_v62 }
  0x13   :  { %v441_v58 = vsel %vm49_vm0, %v389_v56, 0.0  ;;  %v391_v5 = vmul.f32 %v101_v59, %v101_v59  ;;  %v103_v9 = vmul.f32 %v1074_v7, %v1074_v7  ;;  %v799_v15 = vpack.i.bf16 %v955_v1, %v1082_v10 }
  0x14   :  { %v444_v63 = vsel %vm49_vm0, %v390_v61, 0.0  ;;  %v322_v4 = vsel %vm49_vm0, %v102_v3, 0.0  ;;  %v392_v12 = vmul.f32 %v102_v3, %v102_v3  ;;  %v104_v18 = vmul.f32 %v1088_v13, %v1088_v13 }
  0x15   :  { %299 = vadd.xlane.f32.xlu1 %v298_v25  ;;  %421 = vadd.xlane.f32.xlu0 %v420_v26  ;;  %v447_v8 = vsel %vm49_vm0, %v391_v5, 0.0  ;;  %v325_v11 = vsel %vm49_vm0, %v103_v9, 0.0  ;;  %v801_v20 = vpack.i.bf16 %v960_v2, %v1095_v16  ;;  %v393_v23 = vmul.f32 %v103_v9, %v103_v9  ;;  %v1113_v26 = vld [vmem:[%s1391_s0 + $0x98] sm:$0xff] }
  0x16   :  { %v450_v17 = vsel %vm49_vm0, %v392_v12, 0.0  ;;  %v328_v22 = vsel %vm49_vm0, %v104_v18, 0.0  ;;  %v803_v25 = vpack.i.bf16 %v950_v0, %v1105_v21  ;;  %v105_v28 = vmul.f32 %v1082_v10, %v1082_v10 }
  0x17   :  { %v453_v27 = vsel %vm49_vm0, %v393_v23, 0.0  ;;  %v394_v33 = vmul.f32 %v104_v18, %v104_v18  ;;  %v106_v38 = vmul.f32 %v1095_v16, %v1095_v16  ;;  %v1203_v18 = vld [vmem:[%s1391_s0 + $0xe8] sm:$0xff]  ;;  %vm54_vm2 = vcmask 0  }
  0x18   :  { %v331_v32 = vsel %vm49_vm0, %v105_v28, 0.0  ;;  %v825_v23 = vpack.i.bf16 %v1065_v62, %v1203_v18 }
  0x19   :  { %302 = vadd.xlane.f32.xlu1 %v301_v30  ;;  %424 = vadd.xlane.f32.xlu0 %v423_v31  ;;  %v805_v30 = vpack.i.bf16 %v971_v6, %v1113_v26  ;;  %v1123_v31 = vld [vmem:[%s1391_s0 + $0xa0] sm:$0xff]  ;;  %v456_v37 = vsel %vm49_vm0, %v394_v33, 0.0  ;;  %v334_v41 = vsel %vm49_vm0, %v106_v38, 0.0 }
  0x1d   :  { %305 = vadd.xlane.f32.xlu1 %v304_v35  ;;  %427 = vadd.xlane.f32.xlu0 %v426_v36  ;;  %v807_v35 = vpack.i.bf16 %v982_v14, %v1123_v31  ;;  %v1131_v36 = vld [vmem:[%s1391_s0 + $0xa8] sm:$0xff] }
  0x21   :  { %308 = vadd.xlane.f32.xlu1 %v307_v39  ;;  %430 = vadd.xlane.f32.xlu0 %v429_v40  ;;  %v809_v39 = vpack.i.bf16 %v991_v19, %v1131_v36  ;;  %v1141_v40 = vld [vmem:[%s1391_s0 + $0xb0] sm:$0xff] }
  0x22   :  { %v811_v44 = vpack.i.bf16 %v1000_v24, %v1141_v40 }
  0x25   :  { %433 = vadd.xlane.f32.xlu0 %v432_v43  ;;  %v395_v43 = vmul.f32 %v105_v28, %v105_v28 }
  0x27   :  { %v459_v46 = vsel %vm49_vm0, %v395_v43, 0.0 }
  0x29   :  { %311 = vadd.xlane.f32.xlu0 %v310_v45  ;;  %v1149_v45 = vld [vmem:[%s1391_s0 + $0xb8] sm:$0xff] }
  0x2a   :  { %v813_v49 = vpack.i.bf16 %v1009_v29, %v1149_v45 }
  0x2d   :  { %436 = vadd.xlane.f32.xlu0 %v435_v48  ;;  %v107_v48 = vmul.f32 %v1105_v21, %v1105_v21 }
  0x2f   :  { %v337_v51 = vsel %vm49_vm0, %v107_v48, 0.0 }
  0x31   :  { %314 = vadd.xlane.f32.xlu0 %v313_v50  ;;  %v1159_v50 = vld [vmem:[%s1391_s0 + $0xc0] sm:$0xff] }
  0x32   :  { %v815_v54 = vpack.i.bf16 %v1018_v34, %v1159_v50 }
  0x35   :  { %439 = vadd.xlane.f32.xlu0 %v438_v53  ;;  %v396_v53 = vmul.f32 %v106_v38, %v106_v38 }
  0x37   :  { %v462_v56 = vsel %vm49_vm0, %v396_v53, 0.0 }
  0x39   :  { %317 = vadd.xlane.f32.xlu0 %v316_v55  ;;  %v1167_v55 = vld [vmem:[%s1391_s0 + $0xc8] sm:$0xff] }
  0x3a   :  { %v817_v59 = vpack.i.bf16 %v1029_v42, %v1167_v55 }
  0x3d   :  { %442 = vadd.xlane.f32.xlu0 %v441_v58  ;;  %v108_v58 = vmul.f32 %v1113_v26, %v1113_v26 }
  0x3f   :  { %v340_v61 = vsel %vm49_vm0, %v108_v58, 0.0 }
  0x41   :  { %320 = vadd.xlane.f32.xlu0 %v319_v60  ;;  %v1177_v60 = vld [vmem:[%s1391_s0 + $0xd0] sm:$0xff] }
  0x42   :  { %v819_v3 = vpack.i.bf16 %v1038_v47, %v1177_v60 }
  0x45   :  { %445 = vadd.xlane.f32.xlu0 %v444_v63  ;;  %v397_v63 = vmul.f32 %v107_v48, %v107_v48  ;;  %v743_v48 = vpack.c.bf16 %v1095_v16, %v1082_v10 }
  0x47   :  { %v465_v5 = vsel %vm49_vm0, %v397_v63, 0.0  ;;  %744 = vmatprep.subr.bf16.mxu0 %v743_v48  ;;  %775 = vmatprep.subr.bf16.mxu1 %v743_v48 }
  0x49   :  { %323 = vadd.xlane.f32.xlu0 %v322_v4  ;;  %v1185_v4 = vld [vmem:[%s1391_s0 + $0xd8] sm:$0xff] }
  0x4a   :  { %v821_v9 = vpack.i.bf16 %v1047_v52, %v1185_v4 }
  0x4d   :  { %448 = vadd.xlane.f32.xlu0 %v447_v8  ;;  %v109_v8 = vmul.f32 %v1123_v31, %v1123_v31 }
  0x4f   :  { %v343_v12 = vsel %vm49_vm0, %v109_v8, 0.0  ;;  %v399_v28 = vmul.f32 %v109_v8, %v109_v8 }
  0x51   :  { %326 = vadd.xlane.f32.xlu0 %v325_v11  ;;  %v1195_v11 = vld [vmem:[%s1391_s0 + $0xe0] sm:$0xff]  ;;  %v471_v33 = vsel %vm49_vm0, %v399_v28, 0.0 }
  0x54   :  { %800 = vxpose.xlu1.b32.start [1/16] (narrow) %v799_v15, 32  ;;  %v398_v15 = vmul.f32 %v108_v58, %v108_v58  ;;  %v113_v58 = vmul.f32 %v1159_v50, %v1159_v50 }
  0x55   :  { %451 = vadd.xlane.f32.xlu0 %v450_v17  ;;  %v823_v17 = vpack.i.bf16 %v1056_v57, %v1195_v11 }
  0x56   :  { %v355_v63 = vsel %vm49_vm0, %v113_v58, 0.0 }
  0x58   :  { %802 = vxpose.xlu1.b32.cont [2/16] (narrow) %v801_v20, 32  ;;  %v468_v20 = vsel %vm49_vm0, %v398_v15, 0.0 }
  0x59   :  { %329 = vadd.xlane.f32.xlu0 %v328_v22  ;;  %v1208_v22 = vmul.f32 %v1131_v36, %v1131_v36 }
  0x5c   :  { %804 = vxpose.xlu1.b32.cont [3/16] (narrow) %v803_v25, 32  ;;  %v1215_v25 = vld [vmem:[%s1391_s0 + $0xf0] sm:$0xff] }
  0x5d   :  { %454 = vadd.xlane.f32.xlu0 %v453_v27  ;;  %v346_v27 = vsel %vm49_vm0, %v1208_v22, 0.0 }
  0x60   :  { %806 = vxpose.xlu1.b32.cont [4/16] (narrow) %v805_v30, 32  ;;  %v827_v30 = vpack.i.bf16 %v1074_v7, %v1215_v25 }
  0x61   :  { %332 = vadd.xlane.f32.xlu0 %v331_v32  ;;  %v1224_v32 = vld [vmem:[%s1391_s0 + $0xf8] sm:$0xff]  ;;  %s922_s0 = smov [#allocation2]  }
  0x62   :  { %s655_s22 = sshll.u32 %s922_s0, 4  ;;  %s656_s22 = int_to_ptr.vmem [resolvable:$true] %s655_s22 }
  0x63   :  { %s851_s23 = scalar_lea.vmem %s656_s22, 512  ;;  %p856_p1 = scmp.lt.s32.totalorder %s656_s22, %s656_s22 }
  0x64   :  { %808 = vxpose.xlu1.b32.cont [5/16] (narrow) %v807_v35, 32  ;;  %v111_v35 = vmul.f32 %v1141_v40, %v1141_v40  ;;  %p852_p0 = scmp.ne.s32.totalorder %s656_s22, %s851_s23  ;;  %p857_p2 = scmp.lt.s32.totalorder %s851_s23, %s851_s23 }
  0x65   :  { %457 = vadd.xlane.f32.xlu0 %v456_v37  ;;  %v829_v37 = vpack.i.bf16 %v1088_v13, %v1224_v32 }
  0x66   :  { %v349_v38 = vsel %vm49_vm0, %v111_v35, 0.0  ;;  %p858_p3 = por %p857_p2, %p856_p1 }
  0x68   :  { %810 = vxpose.xlu1.b32.cont [6/16] (narrow) %v809_v39, 32  ;;  %v112_v39 = vmul.f32 %v1149_v45, %v1149_v45  ;;  %p859_p4 = pnand %p858_p3, %p852_p0 }
  0x69   :  { %335 = vadd.xlane.f32.xlu0 %v334_v41 }
  0x6c   :  { %812 = vxpose.xlu1.b32.cont [7/16] (narrow) %v811_v44, 32  ;;  %v352_v44 = vsel %vm49_vm0, %v112_v39, 0.0 }
  0x6d   :  { %460 = vadd.xlane.f32.xlu0 %v459_v46  ;;  %v401_v46 = vmul.f32 %v111_v35, %v111_v35  ;;  %v403_v35 = vmul.f32 %v113_v58, %v113_v58 }
  0x70   :  { %814 = vxpose.xlu1.b32.cont [8/16] (narrow) %v813_v49, 32 }
  0x71   :  { %338 = vadd.xlane.f32.xlu0 %v337_v51  ;;  %v745_v51 = vpack.c.bf16 %v960_v2, %v955_v1  ;;  %v749_v1 = vpack.c.bf16 %v971_v6, %v950_v0  ;;  %v753_v0 = vpack.c.bf16 %v991_v19, %v982_v14  ;;  %v757_v14 = vpack.c.bf16 %v1009_v29, %v1000_v24 }
  0x72   :  { %v761_v24 = vpack.c.bf16 %v1029_v42, %v1018_v34  ;;  %v765_v34 = vpack.c.bf16 %v1047_v52, %v1038_v47  ;;  %v769_v47 = vpack.c.bf16 %v1065_v62, %v1056_v57  ;;  %v773_v62 = vpack.c.bf16 %v1088_v13, %v1074_v7 }
  0x73   :  { %746 = vmatpush3.bf16.msra.mxu0 %v745_v51  ;;  %783 = vmatpush3.bf16.msra.mxu1 %v745_v51 }
  0x74   :  { %816 = vxpose.xlu1.b32.cont [9/16] (narrow) %v815_v54, 32 }
  0x75   :  { %463 = vadd.xlane.f32.xlu0 %v462_v56  ;;  %v477_v56 = vsel %vm49_vm0, %v401_v46, 0.0 }
  0x78   :  { %818 = vxpose.xlu1.b32.cont [10/16] (narrow) %v817_v59, 32 }
  0x79   :  { %341 = vadd.xlane.f32.xlu0 %v340_v61  ;;  %v747_v61 = vpack.c.bf16 %v1113_v26, %v1105_v21  ;;  %v751_v21 = vpack.c.bf16 %v1131_v36, %v1123_v31  ;;  %v755_v36 = vpack.c.bf16 %v1149_v45, %v1141_v40  ;;  %v759_v40 = vpack.c.bf16 %v1167_v55, %v1159_v50 }
  0x7b   :  { %748 = vmatprep.subr.bf16.mxu0 %v747_v61  ;;  %776 = vmatprep.subr.bf16.mxu1 %v747_v61 }
  0x7c   :  { %820 = vxpose.xlu1.b32.cont [11/16] (narrow) %v819_v3, 32  ;;  %v402_v3 = vmul.f32 %v112_v39, %v112_v39  ;;  %750 = vmatpush3.bf16.msra.mxu0 %v749_v1 }
  0x7d   :  { %466 = vadd.xlane.f32.xlu0 %v465_v5  ;;  %784 = vmatpush3.bf16.msra.mxu1 %v749_v1  ;;  %v116_v1 = vmul.f32 %v1185_v4, %v1185_v4 }
  0x7e   :  { %752 = vmatprep.subr.bf16.mxu0 %v751_v21  ;;  %777 = vmatprep.subr.bf16.mxu1 %v751_v21 }
  0x80   :  { %822 = vxpose.xlu1.b32.cont [12/16] (narrow) %v821_v9, 32  ;;  %754 = vmatpush3.bf16.msra.mxu0 %v753_v0 }
  0x81   :  { %344 = vadd.xlane.f32.xlu0 %v343_v12  ;;  %785 = vmatpush3.bf16.msra.mxu1 %v753_v0 }
  0x82   :  { %756 = vmatprep.subr.bf16.mxu0 %v755_v36  ;;  %778 = vmatprep.subr.bf16.mxu1 %v755_v36 }
  0x84   :  { %824 = vxpose.xlu1.b32.cont [13/16] (narrow) %v823_v17, 32  ;;  %v480_v17 = vsel %vm49_vm0, %v402_v3, 0.0  ;;  %758 = vmatpush3.bf16.msra.mxu0 %v757_v14 }
  0x85   :  { %469 = vadd.xlane.f32.xlu0 %v468_v20  ;;  %v114_v20 = vmul.f32 %v1167_v55, %v1167_v55  ;;  %786 = vmatpush3.bf16.msra.mxu1 %v757_v14  ;;  %v763_v55 = vpack.c.bf16 %v1185_v4, %v1177_v60  ;;  %v364_v4 = vsel %vm49_vm0, %v116_v1, 0.0 }
  0x86   :  { %760 = vmatprep.subr.bf16.mxu0 %v759_v40  ;;  %779 = vmatprep.subr.bf16.mxu1 %v759_v40  ;;  %v120_v40 = vmul.f32 %v1224_v32, %v1224_v32 }
  0x88   :  { %826 = vxpose.xlu1.b32.cont [14/16] (narrow) %v825_v23, 32  ;;  %762 = vmatpush3.bf16.msra.mxu0 %v761_v24 }
  0x89   :  { %347 = vadd.xlane.f32.xlu0 %v346_v27  ;;  %787 = vmatpush3.bf16.msra.mxu1 %v761_v24 }
  0x8a   :  { %764 = vmatprep.subr.bf16.mxu0 %v763_v55  ;;  %780 = vmatprep.subr.bf16.mxu1 %v763_v55 }
  0x8c   :  { %828 = vxpose.xlu1.b32.cont [15/16] (narrow) %v827_v30, 32  ;;  %766 = vmatpush3.bf16.msra.mxu0 %v765_v34 }
  0x8d   :  { %472 = vadd.xlane.f32.xlu0 %v471_v33  ;;  %v358_v33 = vsel %vm49_vm0, %v114_v20, 0.0  ;;  %788 = vmatpush3.bf16.msra.mxu1 %v765_v34 }
  0x90   :  { %830 = vxpose.xlu1.b32.end [16/16] (narrow) %v829_v37, 32 }
  0x91   :  { %350 = vadd.xlane.f32.xlu0 %v349_v38 }
  0x92   :  { %v291_v41 = vpop.xlane.xlu1 %290  ;;  %v285_v43 = vpop.xlane.xlu0 %284 }
  0x93   :  { %v507_v49 = vmul.f32 %v285_v43, %v285_v43  ;;  %v509_v26 = vmul.f32 %v291_v41, %v291_v41  ;;  %v483_v41 = vsel %vm49_vm0, %v403_v35, 0.0  ;;  %v115_v43 = vmul.f32 %v1177_v60, %v1177_v60 }
  0x95   :  { %353 = vadd.xlane.f32.xlu0 %v352_v44  ;;  %v361_v51 = vsel %vm49_vm0, %v115_v43, 0.0 }
  0x96   :  { %v413_v53 = vpop.xlane.xlu1 %412  ;;  %v288_v54 = vpop.xlane.xlu0 %287 }
  0x97   :  { %v539_v59 = vsub.f32 %v507_v49, %v413_v53  ;;  %v508_v10 = vmul.f32 %v288_v54, %v288_v54  ;;  %v404_v53 = vmul.f32 %v114_v20, %v114_v20  ;;  %v118_v20 = vmul.f32 %v1203_v18, %v1203_v18 }
  0x99   :  { %478 = vadd.xlane.f32.xlu0 %v477_v56  ;;  %v572_v8 = vsel %vm571_vm1, %v539_v59, 0.0  ;;  %v767_v56 = vpack.c.bf16 %v1203_v18, %v1195_v11  ;;  %v370_v14 = vsel %vm49_vm0, %v118_v20, 0.0  ;;  %v408_v35 = vmul.f32 %v118_v20, %v118_v20 }
  0x9a   :  { %v294_v2 = vpop.xlane.xlu1 %293  ;;  %v416_v16 = vpop.xlane.xlu0 %415 }
  0x9b   :  { %v540_v5 = vsub.f32 %v508_v10, %v416_v16  ;;  %v510_v23 = vmul.f32 %v294_v2, %v294_v2  ;;  %768 = vmatprep.subr.bf16.mxu0 %v767_v56  ;;  %v486_v10 = vsel %vm49_vm0, %v404_v53, 0.0  ;;  %781 = vmatprep.subr.bf16.mxu1 %v767_v56  ;;  %v400_v16 = vmul.f32 %v1208_v22, %v1208_v22 }
  0x9c   :  { %770 = vmatpush3.bf16.msra.mxu0 %v769_v47  ;;  %789 = vmatpush3.bf16.msra.mxu1 %v769_v47  ;;  %v498_v24 = vsel %vm49_vm0, %v408_v35, 0.0 }
  0x9d   :  { %v573_v9 = vsel %vm571_vm1, %v540_v5, 0.0  ;;  %356 = vadd.xlane.f32.xlu0 %v355_v63  ;;  %v771_v63 = vpack.c.bf16 %v1224_v32, %v1215_v25  ;;  %v474_v22 = vsel %vm49_vm0, %v400_v16, 0.0 }
  0x9e   :  { %v574_v6 = vadd.f32 %v573_v9, %v572_v8  ;;  %v297_v12 = vpop.xlane.xlu1 %296  ;;  %v419_v15 = vpop.xlane.xlu0 %418  ;;  %v117_v9 = vmul.f32 %v1195_v11, %v1195_v11 }
  0x9f   :  { %v541_v31 = vsub.f32 %v509_v26, %v419_v15  ;;  %v511_v45 = vmul.f32 %v297_v12, %v297_v12  ;;  %v405_v26 = vmul.f32 %v115_v43, %v115_v43  ;;  %772 = vmatprep.subr.bf16.mxu0 %v771_v63  ;;  %782 = vmatprep.subr.bf16.mxu1 %v771_v63 }
  0xa0   :  { %774 = vmatpush3.bf16.msra.mxu0 %v773_v62  ;;  %790 = vmatpush3.bf16.msra.mxu1 %v773_v62  ;;  %v406_v15 = vmul.f32 %v116_v1, %v116_v1 }
  0xa1   :  { %v575_v27 = vsel %vm571_vm1, %v541_v31, 0.0  ;;  %481 = vadd.xlane.f32.xlu0 %v480_v17  ;;  %v489_v12 = vsel %vm49_vm0, %v405_v26, 0.0  ;;  %v367_v17 = vsel %vm49_vm0, %v117_v9, 0.0 }
  0xa2   :  { %v576_v19 = vadd.f32 %v575_v27, %v574_v6  ;;  %v300_v28 = vpop.xlane.xlu1 %299  ;;  %v422_v30 = vpop.xlane.xlu0 %421  ;;  %v492_v11 = vsel %vm49_vm0, %v406_v15, 0.0 }
  0xa3   :  { %v542_v37 = vsub.f32 %v510_v23, %v422_v30  ;;  %v512_v46 = vmul.f32 %v300_v28, %v300_v28  ;;  %v407_v23 = vmul.f32 %v117_v9, %v117_v9 }
  0xa5   :  { %v577_v38 = vsel %vm571_vm1, %v542_v37, 0.0  ;;  %359 = vadd.xlane.f32.xlu0 %v358_v33  ;;  %v495_v18 = vsel %vm49_vm0, %v407_v23, 0.0 }
  0xa6   :  { %v578_v29 = vadd.f32 %v577_v38, %v576_v19  ;;  %v425_v39 = vpop.xlane.xlu0 %424  ;;  %v303_v50 = vpop.xlane.xlu1 %302  ;;  %v119_v19 = vmul.f32 %v1215_v25, %v1215_v25 }
  0xa7   :  { %v543_v44 = vsub.f32 %v511_v45, %v425_v39  ;;  %v513_v60 = vmul.f32 %v303_v50, %v303_v50  ;;  %v376_v39 = vsel %vm49_vm0, %v120_v40, 0.0 }
  0xa8   :  { %v373_v37 = vsel %vm49_vm0, %v119_v19, 0.0  ;;  %v409_v25 = vmul.f32 %v119_v19, %v119_v19 }
  0xa9   :  { %v579_v48 = vsel %vm571_vm1, %v543_v44, 0.0  ;;  %484 = vadd.xlane.f32.xlu0 %v483_v41  ;;  %v410_v41 = vmul.f32 %v120_v40, %v120_v40 }
  0xaa   :  { %v580_v42 = vadd.f32 %v579_v48, %v578_v29  ;;  %v428_v49 = vpop.xlane.xlu0 %427  ;;  %v306_v52 = vpop.xlane.xlu1 %305  ;;  %v501_v55 = vsel %vm49_vm0, %v409_v25, 0.0 }
  0xab   :  { %v544_v54 = vsub.f32 %v512_v46, %v428_v49  ;;  %v514_v3 = vmul.f32 %v306_v52, %v306_v52  ;;  %v504_v32 = vsel %vm49_vm0, %v410_v41, 0.0 }
  0xad   :  { %v581_v58 = vsel %vm571_vm1, %v544_v54, 0.0  ;;  %362 = vadd.xlane.f32.xlu0 %v361_v51 }
  0xae   :  { %v582_v59 = vadd.f32 %v581_v58, %v580_v42  ;;  %v431_v61 = vpop.xlane.xlu0 %430  ;;  %v309_v6 = vpop.xlane.xlu1 %308 }
  0xaf   :  { %v545_v2 = vsub.f32 %v513_v60, %v431_v61  ;;  %v515_v31 = vmul.f32 %v309_v6, %v309_v6 }
  0xb1   :  { %v583_v57 = vsel %vm571_vm1, %v545_v2, 0.0  ;;  %487 = vadd.xlane.f32.xlu0 %v486_v10 }
  0xb2   :  { %v584_v5 = vadd.f32 %v583_v57, %v582_v59  ;;  %v434_v21 = vpop.xlane.xlu0 %433 }
  0xb3   :  { %v546_v8 = vsub.f32 %v514_v3, %v434_v21 }
  0xb5   :  { %v585_v0 = vsel %vm571_vm1, %v546_v8, 0.0  ;;  %365 = vadd.xlane.f32.xlu0 %v364_v4 }
  0xb6   :  { %v586_v7 = vadd.f32 %v585_v0, %v584_v5  ;;  %v312_v13 = vpop.xlane.xlu0 %311 }
  0xb7   :  { %475 = vadd.xlane.f32.xlu1 %v474_v22  ;;  %v516_v45 = vmul.f32 %v312_v13, %v312_v13 }
  0xb9   :  { %490 = vadd.xlane.f32.xlu0 %v489_v12 }
  0xba   :  { %v437_v36 = vpop.xlane.xlu0 %436 }
  0xbb   :  { %v547_v27 = vsub.f32 %v515_v31, %v437_v36  ;;  %368 = vadd.xlane.f32.xlu1 %v367_v17 }
  0xbd   :  { %v587_v28 = vsel %vm571_vm1, %v547_v27, 0.0  ;;  %493 = vadd.xlane.f32.xlu0 %v492_v11 }
  0xbe   :  { %v588_v30 = vadd.f32 %v587_v28, %v586_v7  ;;  %v315_v33 = vpop.xlane.xlu0 %314 }
  0xbf   :  { %371 = vadd.xlane.f32.xlu1 %v370_v14  ;;  %v517_v46 = vmul.f32 %v315_v33, %v315_v33 }
  0xc1   :  { %496 = vadd.xlane.f32.xlu0 %v495_v18 }
  0xc2   :  { %v440_v38 = vpop.xlane.xlu0 %439 }
  0xc3   :  { %v548_v29 = vsub.f32 %v516_v45, %v440_v38  ;;  %374 = vadd.xlane.f32.xlu1 %v373_v37 }
  0xc5   :  { %v589_v43 = vsel %vm571_vm1, %v548_v29, 0.0  ;;  %499 = vadd.xlane.f32.xlu0 %v498_v24 }
  0xc6   :  { %v590_v44 = vadd.f32 %v589_v43, %v588_v30  ;;  %v318_v50 = vpop.xlane.xlu0 %317 }
  0xc7   :  { %377 = vadd.xlane.f32.xlu1 %v376_v39  ;;  %v518_v53 = vmul.f32 %v318_v50, %v318_v50 }
  0xc9   :  { %502 = vadd.xlane.f32.xlu0 %v501_v55 }
  0xca   :  { %v443_v48 = vpop.xlane.xlu0 %442 }
  0xcb   :  { %v549_v34 = vsub.f32 %v517_v46, %v443_v48  ;;  %505 = vadd.xlane.f32.xlu1 %v504_v32 }
  0xcd   :  { %v591_v42 = vsel %vm571_vm1, %v549_v34, 0.0 }
  0xce   :  { %v592_v49 = vadd.f32 %v591_v42, %v590_v44  ;;  %v321_v51 = vpop.xlane.xlu0 %320 }
  0xcf   :  { %v519_v10 = vmul.f32 %v321_v51, %v321_v51 }
  0xd2   :  { %v446_v54 = vpop.xlane.xlu0 %445 }
  0xd3   :  { %v550_v56 = vsub.f32 %v518_v53, %v446_v54 }
  0xd4   :  { %v831_v60 = vpop.trf.xlu1 }
  0xd5   :  { %v593_v58 = vsel %vm571_vm1, %v550_v56, 0.0  ;;  %v832_v47 = vunpack.i.l.bf16 %v831_v60  ;;  %v835_v61 = vunpack.i.h.bf16 %v831_v60 }
  0xd6   :  { %v594_v52 = vadd.f32 %v593_v58, %v592_v49  ;;  %v324_v59 = vpop.xlane.xlu0 %323 }
  0xd7   :  { %253 = vmatprep.mubr.f32.mxu0 %v832_v47  ;;  %v520_v8 = vmul.f32 %v324_v59, %v324_v59 }
  0xd8   :  { %v836_v1 = vpop.trf.xlu1  ;;  %254 = vmatmul.mubr.f32.vlgmr.msra.gmra.mrb[0].mxu0 %v835_v61 }
  0xd9   :  { %v837_v2 = vunpack.i.l.bf16 %v836_v1  ;;  %v840_v16 = vunpack.i.h.bf16 %v836_v1 }
  0xda   :  { %v449_v63 = vpop.xlane.xlu0 %448 }
  0xdb   :  { %v551_v3 = vsub.f32 %v519_v10, %v449_v63  ;;  %258 = vmatprep.mubr.f32.mxu0 %v837_v2 }
  0xdc   :  { %v841_v57 = vpop.trf.xlu1  ;;  %259 = vmatmul.mubr.f32.gmra.mrb[2].mxu0 %v840_v16 }
  0xdd   :  { %v595_v62 = vsel %vm571_vm1, %v551_v3, 0.0  ;;  %v842_v5 = vunpack.i.l.bf16 %v841_v57  ;;  %v845_v26 = vunpack.i.h.bf16 %v841_v57 }
  0xde   :  { %v596_v21 = vadd.f32 %v595_v62, %v594_v52  ;;  %v327_v4 = vpop.xlane.xlu0 %326 }
  0xdf   :  { %263 = vmatprep.mubr.f32.mxu1 %v842_v5  ;;  %v521_v17 = vmul.f32 %v327_v4, %v327_v4 }
  0xe0   :  { %v846_v22 = vpop.trf.xlu1  ;;  %264 = vmatmul.mubr.f32.vlgmr.msra.gmra.mrb[0].mxu1 %v845_v26 }
  0xe1   :  { %v847_v9 = vunpack.i.l.bf16 %v846_v22  ;;  %v850_v0 = vunpack.i.h.bf16 %v846_v22 }
  0xe2   :  { %v452_v6 = vpop.xlane.xlu0 %451 }
  0xe3   :  { %v552_v7 = vsub.f32 %v520_v8, %v452_v6  ;;  %268 = vmatprep.mubr.f32.mxu1 %v847_v9 }
  0xe4   :  { %269 = vmatmul.mubr.f32.gmra.mrb[2].mxu1 %v850_v0 }
  0xe5   :  { %v597_v13 = vsel %vm571_vm1, %v552_v7, 0.0 }
  0xe6   :  { %v598_v12 = vadd.f32 %v597_v13, %v596_v21  ;;  %v330_v15 = vpop.xlane.xlu0 %329 }
  0xe7   :  { %v522_v27 = vmul.f32 %v330_v15, %v330_v15 }
  0xea   :  { %v455_v20 = vpop.xlane.xlu0 %454 }
  0xeb   :  { %v553_v31 = vsub.f32 %v521_v17, %v455_v20 }
  0xed   :  { %v599_v36 = vsel %vm571_vm1, %v553_v31, 0.0 }
  0xee   :  { %v600_v11 = vadd.f32 %v599_v36, %v598_v12  ;;  %v333_v23 = vpop.xlane.xlu0 %332 }
  0xef   :  { %v523_v18 = vmul.f32 %v333_v23, %v333_v23 }
  0xf2   :  { %v458_v14 = vpop.xlane.xlu0 %457 }
  0xf3   :  { %v554_v19 = vsub.f32 %v522_v27, %v458_v14 }
  0xf5   :  { %v601_v28 = vsel %vm571_vm1, %v554_v19, 0.0 }
  0xf6   :  { %v602_v30 = vadd.f32 %v601_v28, %v600_v11  ;;  %v336_v33 = vpop.xlane.xlu0 %335 }
  0xf7   :  { %v524_v24 = vmul.f32 %v336_v33, %v336_v33 }
  0xfa   :  { %v461_v35 = vpop.xlane.xlu0 %460 }
  0xfb   :  { %v555_v37 = vsub.f32 %v523_v18, %v461_v35 }
  0xfd   :  { %v603_v40 = vsel %vm571_vm1, %v555_v37, 0.0 }
  0xfe   :  { %v604_v45 = vadd.f32 %v603_v40, %v602_v30  ;;  %v339_v38 = vpop.xlane.xlu0 %338 }
  0xff   :  { %v525_v56 = vmul.f32 %v339_v38, %v339_v38 }
 0x102   :  { %v464_v25 = vpop.xlane.xlu0 %463 }
 0x103   :  { %v556_v29 = vsub.f32 %v524_v24, %v464_v25 }
 0x105   :  { %v605_v39 = vsel %vm571_vm1, %v556_v29, 0.0 }
 0x106   :  { %v606_v41 = vadd.f32 %v605_v39, %v604_v45  ;;  %v342_v43 = vpop.xlane.xlu0 %341 }
 0x107   :  { %v526_v58 = vmul.f32 %v342_v43, %v342_v43 }
 0x10a   :  { %v467_v44 = vpop.xlane.xlu0 %466 }
 0x10b   :  { %v557_v47 = vsub.f32 %v525_v56, %v467_v44 }
 0x10d   :  { %v607_v10 = vsel %vm571_vm1, %v557_v47, 0.0 }
 0x10e   :  { %v345_v50 = vpop.xlane.xlu0 %344  ;;  %v608_v16 = vadd.f32 %v607_v10, %v606_v41 }
 0x10f   :  { %v527_v52 = vmul.f32 %v345_v50, %v345_v50 }
 0x112   :  { %v470_v55 = vpop.xlane.xlu0 %469 }
 0x113   :  { %v558_v59 = vsub.f32 %v526_v58, %v470_v55 }
 0x115   :  { %v609_v2 = vsel %vm571_vm1, %v558_v59, 0.0 }
 0x116   :  { %v348_v32 = vpop.xlane.xlu0 %347  ;;  %v610_v5 = vadd.f32 %v609_v2, %v608_v16 }
 0x117   :  { %v528_v3 = vmul.f32 %v348_v32, %v348_v32 }
 0x11a   :  { %v473_v46 = vpop.xlane.xlu0 %472 }
 0x11b   :  { %v559_v1 = vsub.f32 %v527_v52, %v473_v46 }
 0x11d   :  { %v611_v57 = vsel %vm571_vm1, %v559_v1, 0.0 }
 0x11e   :  { %v351_v48 = vpop.xlane.xlu0 %350  ;;  %v612_v22 = vadd.f32 %v611_v57, %v610_v5 }
 0x11f   :  { %v529_v62 = vmul.f32 %v351_v48, %v351_v48 }
 0x122   :  { %v354_v34 = vpop.xlane.xlu0 %353 }
 0x123   :  { %v530_v4 = vmul.f32 %v354_v34, %v354_v34 }
 0x126   :  { %v479_v42 = vpop.xlane.xlu0 %478 }
 0x127   :  { %v561_v26 = vsub.f32 %v529_v62, %v479_v42 }
 0x129   :  { %v615_v15 = vsel %vm571_vm1, %v561_v26, 0.0 }
 0x12a   :  { %v357_v49 = vpop.xlane.xlu0 %356 }
 0x12b   :  { %v531_v0 = vmul.f32 %v357_v49, %v357_v49 }
 0x12e   :  { %v482_v51 = vpop.xlane.xlu0 %481 }
 0x12f   :  { %v562_v6 = vsub.f32 %v530_v4, %v482_v51 }
 0x131   :  { %v617_v11 = vsel %vm571_vm1, %v562_v6, 0.0 }
 0x132   :  { %v360_v53 = vpop.xlane.xlu0 %359 }
 0x133   :  { %v532_v17 = vmul.f32 %v360_v53, %v360_v53 }
 0x136   :  { %v485_v54 = vpop.xlane.xlu0 %484 }
 0x137   :  { %v563_v20 = vsub.f32 %v531_v0, %v485_v54 }
 0x139   :  { %v619_v28 = vsel %vm571_vm1, %v563_v20, 0.0 }
 0x13a   :  { %v363_v60 = vpop.xlane.xlu0 %362 }
 0x13b   :  { %v533_v23 = vmul.f32 %v363_v60, %v363_v60 }
 0x13e   :  { %v488_v61 = vpop.xlane.xlu0 %487 }
 0x13f   :  { %v564_v27 = vsub.f32 %v532_v17, %v488_v61  ;;  %v921_v61 = vmov 0.0  }
 0x140   :  { %50 = vst.msk [vmem:[#allocation2] sm:$0xff] %vm49_vm0, %v921_v61  ;;  %51 = vst.msk [vmem:[#allocation2 + $0x8] sm:$0xff] %vm49_vm0, %v921_v61 }
 0x141   :  { %v621_v37 = vsel %vm571_vm1, %v564_v27, 0.0  ;;  %52 = vst.msk [vmem:[#allocation2 + $0x10] sm:$0xff] %vm49_vm0, %v921_v61  ;;  %53 = vst.msk [vmem:[#allocation2 + $0x18] sm:$0xff] %vm49_vm0, %v921_v61 }
 0x142   :  { %v366_v63 = vpop.xlane.xlu0 %365  ;;  %55 = vst.msk [vmem:[#allocation4] sm:$0x1] %vm54_vm2, %v921_v61  ;;  %56 = vst.msk [vmem:[#allocation6] sm:$0x1] %vm54_vm2, %v921_v61 }
 0x143   :  { %v534_v30 = vmul.f32 %v366_v63, %v366_v63 }
 0x144   :  { %v476_v21 = vpop.xlane.xlu1 %475 }
 0x145   :  { %v560_v8 = vsub.f32 %v528_v3, %v476_v21 }
 0x146   :  { %v491_v9 = vpop.xlane.xlu0 %490 }
 0x147   :  { %v613_v7 = vsel %vm571_vm1, %v560_v8, 0.0  ;;  %v565_v33 = vsub.f32 %v533_v23, %v491_v9  ;;  %v121_v1 = vld [vmem:[#allocation2] sm:$0xff]  ;;  %v122_v57 = vld [vmem:[#allocation2 + $0x8] sm:$0xff] }
 0x148   :  { %v614_v13 = vadd.f32 %v613_v7, %v612_v22  ;;  %v369_v12 = vpop.xlane.xlu1 %368  ;;  %v123_v26 = vld [vmem:[#allocation2 + $0x10] sm:$0xff]  ;;  %v124_v6 = vld [vmem:[#allocation2 + $0x18] sm:$0xff] }
 0x149   :  { %v535_v40 = vmul.f32 %v369_v12, %v369_v12  ;;  %v623_v25 = vsel %vm571_vm1, %v565_v33, 0.0 }
 0x14a   :  { %v616_v31 = vadd.f32 %v615_v15, %v614_v13  ;;  %v494_v36 = vpop.xlane.xlu0 %493 }
 0x14b   :  { %v566_v45 = vsub.f32 %v534_v30, %v494_v36 }
 0x14c   :  { %v618_v14 = vadd.f32 %v617_v11, %v616_v31  ;;  %v372_v19 = vpop.xlane.xlu1 %371 }
 0x14d   :  { %v536_v29 = vmul.f32 %v372_v19, %v372_v19  ;;  %v625_v44 = vsel %vm571_vm1, %v566_v45, 0.0 }
 0x14e   :  { %v620_v18 = vadd.f32 %v619_v28, %v618_v14  ;;  %v497_v35 = vpop.xlane.xlu0 %496 }
 0x14f   :  { %v567_v39 = vsub.f32 %v535_v40, %v497_v35 }
 0x150   :  { %v622_v38 = vadd.f32 %v621_v37, %v620_v18  ;;  %v375_v24 = vpop.xlane.xlu1 %374 }
 0x151   :  { %v627_v46 = vsel %vm571_vm1, %v567_v39, 0.0  ;;  %v537_v48 = vmul.f32 %v375_v24, %v375_v24 }
 0x152   :  { %v624_v41 = vadd.f32 %v623_v25, %v622_v38  ;;  %v500_v43 = vpop.xlane.xlu0 %499 }
 0x153   :  { %v568_v50 = vsub.f32 %v536_v29, %v500_v43 }
 0x154   :  { %v626_v55 = vadd.f32 %v625_v44, %v624_v41  ;;  %v378_v32 = vpop.xlane.xlu1 %377 }
 0x155   :  { %v629_v49 = vsel %vm571_vm1, %v568_v50, 0.0  ;;  %v538_v51 = vmul.f32 %v378_v32, %v378_v32 }
 0x156   :  { %v628_v34 = vadd.f32 %v627_v46, %v626_v55  ;;  %v503_v42 = vpop.xlane.xlu0 %502 }
 0x157   :  { %v569_v53 = vsub.f32 %v537_v48, %v503_v42 }
 0x158   :  { %v630_v54 = vadd.f32 %v629_v49, %v628_v34  ;;  %v506_v56 = vpop.xlane.xlu1 %505 }
 0x159   :  { %v631_v60 = vsel %vm571_vm1, %v569_v53, 0.0  ;;  %v570_v58 = vsub.f32 %v538_v51, %v506_v56 }
 0x15a   :  { %v632_v47 = vadd.f32 %v631_v60, %v630_v54 }
 0x15b   :  { %v633_v52 = vsel %vm571_vm1, %v570_v58, 0.0 }
 0x15c   :  { %v634_v59 = vadd.f32 %v633_v52, %v632_v47 }
 0x15e   :  { %635 = vadd.xlane.f32.xlu0 %v634_v59 }
 0x1ab   :  { %v731_v10 = vpop.f32.mrb[0].mxu0 }
 0x1ac   :  { %v732_v2 = vpop.f32.mrb[1].mxu0 }
 0x1ad   :  { %v733_v16 = vadd.f32 %v732_v2, %v731_v10 }
 0x1af   :  { %v274_v63 = vadd.f32 %v733_v16, %v121_v1  ;;  %v734_v3 = vpop.f32.mrb[2].mxu0 }
 0x1b0   :  { %v735_v62 = vpop.f32.mrb[3].mxu0 }
 0x1b1   :  { %279 = vst.msk [vmem:[#allocation2] sm:$0xff] %vm49_vm0, %v274_v63  ;;  %v736_v5 = vadd.f32 %v735_v62, %v734_v3 }
 0x1b3   :  { %v275_v21 = vadd.f32 %v736_v5, %v122_v57  ;;  %v737_v4 = vpop.f32.mrb[0].mxu1 }
 0x1b4   :  { %v738_v8 = vpop.f32.mrb[1].mxu1 }
 0x1b5   :  { %280 = vst.msk [vmem:[#allocation2 + $0x8] sm:$0xff] %vm49_vm0, %v275_v21  ;;  %v739_v22 = vadd.f32 %v738_v8, %v737_v4 }
 0x1b7   :  { %v276_v9 = vadd.f32 %v739_v22, %v123_v26  ;;  %v740_v0 = vpop.f32.mrb[2].mxu1 }
 0x1b8   :  { %v741_v7 = vpop.f32.mrb[3].mxu1 }
 0x1b9   :  { %281 = vst.msk [vmem:[#allocation2 + $0x10] sm:$0xff] %vm49_vm0, %v276_v9  ;;  %v742_v13 = vadd.f32 %v741_v7, %v740_v0 }
 0x1bb   :  { %v277_v12 = vadd.f32 %v742_v13, %v124_v6 }
 0x1bd   :  { %282 = vst.msk [vmem:[#allocation2 + $0x18] sm:$0xff] %vm49_vm0, %v277_v12 }
 0x1be   :  { %862 = shalt.err (!%p859_p4)
}
 0x1bf   :  { %s863_s26 = scalar_lea.hbm %s1392_s1, 512 }
 0x1c0   :  { %p864_p5 = scmp.ne.s32.totalorder %s1392_s1, %s863_s26  ;;  %p867_p6 = scmp.lt.u32.totalorder %s863_s26, %s1392_s1 }
 0x1c2   :  { %p869_p7 = pnand %p867_p6, %p864_p5 }
 0x1c4   :  { %872 = shalt.err (!%p869_p7)
}
 0x1c5   :  { %s923_s4 = smov 128   ;;  %s924_s5 = smov 8   ;;  %v646_v27 = vld [vmem:[#allocation4] sm:$0x1] }
 0x1c6   :  { %661 = dma.vmem_to_hbm [thread:$0]  %s656_s22, 512, %s1392_s1, [#allocation3], %s923_s4, %s923_s4, %s924_s5  }
 0x1c7   :  { %s925_s8 = smov [#allocation4]   ;;  %s926_s11 = smov [#allocation6]  }
 0x1c8   :  { %s668_s9 = sshll.u32 %s925_s8, 4  ;;  %s678_s12 = sshll.u32 %s926_s11, 4  ;;  %s669_s9 = int_to_ptr.vmem [resolvable:$true] %s668_s9  ;;  %s1358_s12 = int_to_ptr.vmem [resolvable:$true] %s678_s12 }
 0x1c9   :  { %s873_s1 = scalar_lea.vmem %s669_s9, 16  ;;  %s877_s13 = scalar_lea.vmem %s669_s9, 32 }
 0x1ca   :  { %p874_p8 = scmp.ne.s32.totalorder %s669_s9, %s873_s1  ;;  %p878_p9 = scmp.lt.s32.totalorder %s669_s9, %s669_s9 }
 0x1cb   :  { %p879_p10 = scmp.lt.s32.totalorder %s877_s13, %s873_s1 }
 0x1cd   :  { %p880_p11 = por %p879_p10, %p878_p9 }
 0x1cf   :  { %p881_p12 = pnand %p880_p11, %p874_p8 }
 0x1eb   :  { %v636_v15 = vpop.xlane.xlu0 %635 }
 0x1ec   :  { %v637_v17 = vrot.slane %v636_v15, 4 }
 0x1ee   :  { %v638_v20 = vadd.f32 %v637_v17, %v636_v15 }
 0x1f0   :  { %v639_v31 = vrot.slane %v638_v20, 2 }
 0x1f2   :  { %v640_v36 = vadd.f32 %v639_v31, %v638_v20 }
 0x1f4   :  { %v641_v11 = vrot.slane %v640_v36, 1 }
 0x1f6   :  { %v642_v23 = vadd.f32 %v641_v11, %v640_v36 }
 0x1f8   :  { %791 = vpush %v642_v23 }
 0x229   :  { %s792_s10 = spop %791 }
 0x22a   :  { %v644_v14 = vstv %s792_s10 }
 0x22b   :  { %v647_v19 = vadd.f32 %v646_v27, %v644_v14 }
 0x22d   :  { %649 = vst.msk [vmem:[#allocation4] sm:$0x1] %vm54_vm2, %v647_v19 }
 0x22e   :  { %884 = shalt.err (!%p881_p12)
}
 0x22f   :  { %s885_s16 = scalar_lea.hbm %s1393_s2, 16 }
 0x230   :  { %p886_p13 = scmp.ne.s32.totalorder %s1393_s2, %s885_s16  ;;  %p889_p0 = scmp.lt.u32.totalorder %s885_s16, %s1393_s2 }
 0x232   :  { %p891_p1 = pnand %p889_p0, %p886_p13 }
 0x234   :  { %894 = shalt.err (!%p891_p1)
}
 0x235   :  { %671 = dma.vmem_to_hbm [thread:$0]  %s669_s9, 16, %s1393_s2, [#allocation5]  }
 0x236   :  { %s895_s22 = scalar_lea.vmem %s1358_s12, 16  ;;  %s899_s23 = scalar_lea.vmem %s1358_s12, 32 }
 0x237   :  { %p896_p2 = scmp.ne.s32.totalorder %s1358_s12, %s895_s22  ;;  %p900_p3 = scmp.lt.s32.totalorder %s1358_s12, %s1358_s12 }
 0x238   :  { %p901_p4 = scmp.lt.s32.totalorder %s899_s23, %s895_s22 }
 0x23a   :  { %p902_p5 = por %p901_p4, %p900_p3 }
 0x23c   :  { %p903_p6 = pnand %p902_p5, %p896_p2 }
 0x23e   :  { %906 = shalt.err (!%p903_p6)
}
 0x23f   :  { %s907_s26 = scalar_lea.hbm %s1394_s3, 16 }
 0x240   :  { %p908_p7 = scmp.ne.s32.totalorder %s1394_s3, %s907_s26  ;;  %p911_p8 = scmp.lt.u32.totalorder %s907_s26, %s1394_s3 }
 0x242   :  { %p913_p9 = pnand %p911_p8, %p908_p7 }
 0x244   :  { %916 = shalt.err (!%p913_p9)
}
 0x245   :  { %681 = dma.vmem_to_hbm [thread:$0]  %s1358_s12, 16, %s1394_s3, [#allocation5]  }
 0x246   :  { %917 = dma.done.wait [#allocation3], 512  }
 0x247   :  { %918 = vsyncadd [#allocation3], 4294966784 }
 0x248   :  { %919 = dma.done.wait [#allocation5], 32  }
 0x249   :  { %920 = vsyncadd [#allocation5], 4294967264 }
 0x24a   :  { %691 = vsyncpa [#allocation3], 1 }
 0x24b   :  { %692 = vsyncpa [#allocation5], 1 }

</bundles_post_ra>
